<compile_context>
chip_gen: v6e
topology: v6e:2x2x1
jax: 0.10.0
libtpu: 0.0.40
codegen_flags: <defaults>
</compile_context>

<pallas_src>
import math
from functools import partial

import jax
import jax.numpy as jnp
from jax.experimental import pallas as pl
from jax.experimental.pallas import tpu as pltpu

EPS = 1e-5  # RMSNorm eps used in AttentionHog.__init__


def _vmem_limit(est_bytes, *, cap=64 << 20):
    """Explicit scoped-VMEM limit from an estimated block footprint (+margin)."""
    return int(min(cap, est_bytes * 3 // 2 + (8 << 20)))


# ----------------------------------------------------------------------------
# Kernel 1: fused add_k_proj + add_v_proj (one wide bf16 MXU matmul, split into
# a K-half / V-half grid axis) + RMSNorm(K) with the attention scale folded into
# gamma.  Output is a single [2, B, S_img, C_kv] bf16 slab (row 0 = K, row 1 = V)
# that flows straight into the attention kernel.
# ----------------------------------------------------------------------------
def _proj_norm_kernel(enc_ref, w_ref, b_ref, g_ref, kv_ref):
    # enc_ref: [1, S_img, C_in] bf16 (pre-cast in wrapper)
    # w_ref  : [C_in, C_kv] bf16 (K half when program_id(0)==0, else V half)
    # b_ref  : [1, 1, C_kv] f32   (matching half's bias)
    # g_ref  : [1, 1, C_kv] f32   (RMSNorm gamma * 1/sqrt(D), K half only)
    x = jnp.dot(enc_ref[0], w_ref[...], preferred_element_type=jnp.float32)
    x = x + b_ref[0]                                            # [S_img, C_kv] f32
    half = pl.program_id(0)

    @pl.when(half == 0)
    def _():
        # RMSNorm across heads (diffusers RMSNorm, elementwise_affine=True), f32.
        var = jnp.mean(x * x, axis=-1, keepdims=True)
        kv_ref[0, 0] = (x * jax.lax.rsqrt(var + EPS) * g_ref[0]).astype(kv_ref.dtype)

    @pl.when(half != 0)
    def _():
        kv_ref[0, 0] = x.astype(kv_ref.dtype)                   # V half: no norm


def add_kv_proj(enc, w_kv, b_kv, gk_scaled, *, out_dtype=jnp.bfloat16):
    """enc: [B, S_img, C_in] bf16; w_kv: [C_in, 2*C_kv] bf16 (K cols then V cols);
    b_kv: [2, 1, C_kv] f32; gk_scaled: [1, 1, C_kv] f32 (gamma * 1/sqrt(D)).
    Returns kv: [2, B, S_img, C_kv] bf16 (row 0 = normed+scaled K, row 1 = V)."""
    B, S_img, C_in = enc.shape
    C_kv = w_kv.shape[1] // 2

    est_bytes = (C_in * C_kv * 2            # weight half, single-buffered
                 + 2 * S_img * C_in * 2     # enc, double-buffered
                 + 2 * S_img * C_kv * 2     # output block, double-buffered
                 + 2 * S_img * C_kv * 4)    # f32 intermediates

    return pl.pallas_call(
        _proj_norm_kernel,
        out_shape=jax.ShapeDtypeStruct((2, B, S_img, C_kv), out_dtype),
        grid=(2, B),                        # (K/V half, batch); half outermost so the
        in_specs=[                          # single-buffered weight stays resident over B
            pl.BlockSpec((1, S_img, C_in), lambda h, b: (b, 0, 0)),
            pl.BlockSpec((C_in, C_kv), lambda h, b: (0, h),
                         pipeline_mode=pl.Buffered(1)),   # constant over inner axis
            pl.BlockSpec((1, 1, C_kv), lambda h, b: (h, 0, 0)),
            pl.BlockSpec((1, 1, C_kv), lambda h, b: (0, 0, 0)),
        ],
        out_specs=pl.BlockSpec((1, 1, S_img, C_kv), lambda h, b: (h, b, 0, 0)),
        compiler_params=pltpu.CompilerParams(
            dimension_semantics=("parallel", "parallel"),
            vmem_limit_bytes=_vmem_limit(est_bytes)),
    )(enc, w_kv, b_kv, gk_scaled)


# ----------------------------------------------------------------------------
# Kernel 2: added-KV cross attention.  Grid = (batch, head-group, q-tile):
# each step computes HG heads over a lane-dense [tq, HG*D] q/out slab; the
# K/V slab for the head group has a constant block index along the q-tile axis
# so it stays resident.  Scale is pre-folded into K, so there is no per-head
# scaling or casting of q in here.
# ----------------------------------------------------------------------------
def _added_kv_attn_kernel(q_ref, kv_ref, o_ref, *, heads_per_block, head_dim):
    # q_ref : [1, tq, HG*D] bf16;  kv_ref: [2, 1, Skv, HG*D] bf16;  o_ref like q_ref.
    for h in range(heads_per_block):            # small static unroll (<= 8 bodies)
        lo = h * head_dim
        hi = lo + head_dim
        q = q_ref[0, :, lo:hi]                  # [tq, D]   static lane slice
        k = kv_ref[0, 0, :, lo:hi]              # [Skv, D]  (already RMS-normed * scale)
        v = kv_ref[1, 0, :, lo:hi]              # [Skv, D]

        # s[q, kk] = sum_d q[q, d] * k[kk, d]   (no explicit K transpose)
        s = jax.lax.dot_general(q, k, (((1,), (1,)), ((), ())),
                                preferred_element_type=jnp.float32)   # [tq, Skv] f32
        m = jnp.max(s, axis=-1, keepdims=True)
        p = jnp.exp(s - m)
        denom = jnp.sum(p, axis=-1, keepdims=True)

        o = jax.lax.dot_general(p.astype(jnp.bfloat16), v,
                                (((1,), (0,)), ((), ())),
                                preferred_element_type=jnp.float32)   # [tq, D] f32
        # Deferred softmax normalization; full-precision reciprocal (EUP) for parity.
        o = o * pl.reciprocal(denom, approx=False)

        o_ref[0, :, lo:hi] = o.astype(o_ref.dtype)


def _pick_heads_per_block(num_heads, head_dim):
    if head_dim % 128 == 0:                     # real Wan: D=128 -> 128-aligned lane slices
        for hg in (8, 4, 2, 1):
            if num_heads % hg == 0:
                return hg
    # Sub-128 head_dim (toy shapes): keep all heads in one block so the lane block
    # spans the full head-merged channel dim (BlockSpec lane constraint).
    return num_heads


def _pick_q_tile(sq, lane_width):
    """Largest q tile whose bf16 q+out double-buffers fit an ~8 MiB budget
    (fits every generation's scoped VMEM, including v7x)."""
    budget = 8 * 1024 * 1024
    for t in (1024, 512, 256, 128, 64, 32, 16, 8):
        if sq % t == 0 and 4 * t * lane_width * 2 <= budget:
            return t
    return sq


def added_kv_attention(q, kv, *, num_heads, block_q=None, out_dtype=jnp.bfloat16):
    """q: [B, Sq, H*D] bf16 (head-merged); kv: [2, B, S_kv, H*D] bf16 -> [B, Sq, H*D] bf16."""
    B, Sq, C = q.shape
    assert C % num_heads == 0
    D = C // num_heads
    Skv = kv.shape[2]

    HG = _pick_heads_per_block(num_heads, D)
    n_groups = num_heads // HG
    lane = HG * D
    tq = _pick_q_tile(Sq, lane) if block_q is None else block_q

    kernel = partial(_added_kv_attn_kernel, heads_per_block=HG, head_dim=D)

    est_bytes = (4 * tq * lane * 2              # q + out, double-buffered, bf16
                 + 2 * 2 * Skv * lane * 2       # K/V slab, double-buffered
                 + HG * tq * Skv * 4            # f32 score temporaries (rough)
                 + 2 * tq * Skv * 4)

    cost = pl.CostEstimate(
        flops=4 * B * num_heads * Sq * Skv * D,
        transcendentals=B * num_heads * Sq * Skv,
        bytes_accessed=(q.size * q.dtype.itemsize
                        + kv.size * kv.dtype.itemsize
                        + B * Sq * C * jnp.dtype(out_dtype).itemsize),
    )

    return pl.pallas_call(
        kernel,
        out_shape=jax.ShapeDtypeStruct((B, Sq, C), out_dtype),
        grid=(B, n_groups, Sq // tq),
        in_specs=[
            # q/out: each [tq, HG*D] slab read/written exactly once (one dense DMA).
            pl.BlockSpec((1, tq, lane), lambda b, g, i: (b, i, g)),
            # K+V slab for this head group: block index constant along the q-tile
            # (innermost) axis -> stays resident across all q tiles.
            pl.BlockSpec((2, 1, Skv, lane), lambda b, g, i: (0, b, 0, g)),
        ],
        out_specs=pl.BlockSpec((1, tq, lane), lambda b, g, i: (b, i, g)),
        compiler_params=pltpu.CompilerParams(
            dimension_semantics=("parallel", "parallel", "parallel"),
            vmem_limit_bytes=_vmem_limit(est_bytes)),
        cost_estimate=cost,
    )(q, kv)


# ----------------------------------------------------------------------------
# Full added-KV hot path (what AttentionHog contributes to the Wan attention)
# ----------------------------------------------------------------------------
def attention_hog_added_kv(enc, q, wk, bk, wv, bv, gk, *, num_heads):
    """enc: [B, S_img, C_in]; q: [B, S_q, H*D] (head-merged); wk/wv: [C_in, H*D];
    bk/bv/gk: [1, H*D].  Returns [B, S_q, H*D] bf16."""
    C = q.shape[-1]
    D = C // num_heads
    scale = 1.0 / math.sqrt(D)

    # Fuse K and V projections into one wide bf16 weight; fold the attention scale
    # into K's RMSNorm gamma so the attention kernel never scales q.
    w_kv = jnp.concatenate([wk, wv], axis=1).astype(jnp.bfloat16)       # [C_in, 2C]
    b_kv = jnp.stack([bk.reshape(1, -1), bv.reshape(1, -1)], axis=0)    # [2, 1, C]
    b_kv = b_kv.astype(jnp.float32)
    gk_scaled = (gk.reshape(1, 1, -1) * scale).astype(jnp.float32)      # [1, 1, C]

    kv = add_kv_proj(enc.astype(jnp.bfloat16), w_kv, b_kv, gk_scaled)   # bf16
    return added_kv_attention(q.astype(jnp.bfloat16), kv, num_heads=num_heads)


# ----------------------------------------------------------------------------
# Plain-JAX f32 reference (correctness sanity check)
# ----------------------------------------------------------------------------
def _reference(enc, q, wk, bk, wv, bv, gk, num_heads):
    B, Sq, C = q.shape
    D = C // num_heads
    S_img = enc.shape[1]
    k = enc @ wk + bk
    v = enc @ wv + bv
    k = k * jax.lax.rsqrt(jnp.mean(k * k, -1, keepdims=True) + EPS) * gk
    qh = q.reshape(B, Sq, num_heads, D).transpose(0, 2, 1, 3)
    kh = k.reshape(B, S_img, num_heads, D).transpose(0, 2, 1, 3)
    vh = v.reshape(B, S_img, num_heads, D).transpose(0, 2, 1, 3)
    s = jnp.einsum("bhqd,bhkd->bhqk", qh, kh) / math.sqrt(D)
    p = jax.nn.softmax(s, axis=-1)
    o = jnp.einsum("bhqk,bhkd->bhqd", p, vh)
    return o.transpose(0, 2, 1, 3).reshape(B, Sq, C)


if __name__ == "__main__":
    key = jax.random.PRNGKey(0)
    B, H, D = 2, 2, 64
    inner_kv_dim = H * D            # attn_layer.inner_kv_dim (128 -> lane-aligned blocks)
    added_kv_proj_dim = 32          # AttentionHog.added_kv_proj_dim
    S_q, S_img = 16, 8

    k0, k1, k2, k3, k4, k5 = jax.random.split(key, 6)

    # Deterministic parameter init mirroring __init__:
    #   nn.Linear ~ U(-1/sqrt(fan_in), 1/sqrt(fan_in)); weight then * 0.001.
    # Weights stored pre-transposed as [in, out] (y = x @ W + b).
    bound = 1.0 / math.sqrt(added_kv_proj_dim)
    wk = jax.random.uniform(k0, (added_kv_proj_dim, inner_kv_dim),
                            jnp.float32, -bound, bound) * 0.001
    bk = jax.random.uniform(k1, (1, inner_kv_dim), jnp.float32, -bound, bound)
    wv = jax.random.uniform(k2, (added_kv_proj_dim, inner_kv_dim),
                            jnp.float32, -bound, bound) * 0.001
    bv = jax.random.uniform(k3, (1, inner_kv_dim), jnp.float32, -bound, bound)
    gk = jnp.ones((1, inner_kv_dim), jnp.float32)   # RMSNorm weight (ones)

    enc = jax.random.normal(k4, (B, S_img, added_kv_proj_dim), jnp.float32)
    q = jax.random.normal(k5, (B, S_q, inner_kv_dim), jnp.float32)   # head-merged

    out = attention_hog_added_kv(enc, q, wk, bk, wv, bv, gk, num_heads=H)
    out = jax.block_until_ready(out)

    ref = _reference(enc, q, wk, bk, wv, bv, gk, H)
    # bf16 q/K/V/output on the MXU path -> relaxed tolerance vs the f32 reference.
    assert jnp.allclose(out.astype(jnp.float32), ref, atol=2e-2, rtol=2e-2), \
        "mismatch vs reference"

    print("KERNEL_OK")
</pallas_src>

<mosaic_0001>
module attributes {stable_mosaic.version = 11 : i64} {
  func.func @_proj_norm_kernel(%arg0: i32, %arg1: i32, %arg2: memref<1x8x32xbf16, #tpu.memory_space<vmem>>, %arg3: memref<32x128xbf16, #tpu.memory_space<vmem>>, %arg4: memref<1x1x128xf32, #tpu.memory_space<vmem>>, %arg5: memref<1x1x128xf32, #tpu.memory_space<vmem>>, %arg6: memref<1x1x8x128xbf16, #tpu.memory_space<vmem>>) attributes {dimension_semantics = [#tpu.dimension_semantics<parallel>, #tpu.dimension_semantics<parallel>], iteration_bounds = array<i64: 2, 2>, scalar_prefetch = 0 : i64, scratch_operands = 0 : i64, tpu.core_type = #tpu.core_type<tc>, window_params = [{transform_indices = @transform_0, window_bounds = array<i64: 1, 8, 32>}, {pipeline_mode = #tpu.pipeline_mode<synchronous>, transform_indices = @transform_1, window_bounds = array<i64: 32, 128>}, {transform_indices = @transform_2, window_bounds = array<i64: 1, 1, 128>}, {pipeline_mode = #tpu.pipeline_mode<synchronous>, transform_indices = @transform_3, window_bounds = array<i64: 1, 1, 128>}, {transform_indices = @transform_4, window_bounds = array<i64: 1, 1, 8, 128>}]} {
    %c0 = arith.constant 0 : index
    %c0_0 = arith.constant 0 : index
    %c0_1 = arith.constant 0 : index
    %0 = vector.load %arg2[%c0, %c0_0, %c0_1] : memref<1x8x32xbf16, #tpu.memory_space<vmem>>, vector<1x8x32xbf16>
    %1 = vector.shape_cast %0 : vector<1x8x32xbf16> to vector<8x32xbf16>
    %c0_2 = arith.constant 0 : index
    %c0_3 = arith.constant 0 : index
    %2 = vector.load %arg3[%c0_2, %c0_3] : memref<32x128xbf16, #tpu.memory_space<vmem>>, vector<32x128xbf16>
    %cst = arith.constant dense<0.000000e+00> : vector<8x128xf32>
    %3 = tpu.matmul %1, %2, %cst {dimension_numbers = #tpu.dot_dimension_numbers<[1], [0], [0], [1], [0, 0, 1, 1], [], []>} : vector<8x32xbf16>, vector<32x128xbf16>, vector<8x128xf32> -> vector<8x128xf32>
    %c0_4 = arith.constant 0 : index
    %c0_5 = arith.constant 0 : index
    %c0_6 = arith.constant 0 : index
    %4 = vector.load %arg4[%c0_4, %c0_5, %c0_6] : memref<1x1x128xf32, #tpu.memory_space<vmem>>, vector<1x1x128xf32>
    %5 = vector.shape_cast %4 : vector<1x1x128xf32> to vector<1x128xf32>
    %6 = vector.broadcast %5 : vector<1x128xf32> to vector<8x128xf32>
    %7 = arith.addf %3, %6 : vector<8x128xf32>
    %c0_i32 = arith.constant 0 : i32
    %8 = arith.cmpi eq, %arg0, %c0_i32 : i32
    %9 = arith.extui %8 : i1 to i32
    %c0_i32_7 = arith.constant 0 : i32
    %10 = arith.cmpi ne, %9, %c0_i32_7 : i32
    scf.if %10 {
      %14 = arith.mulf %7, %7 : vector<8x128xf32>
      %cst_10 = arith.constant dense<0.000000e+00> : vector<8xf32>
      %15 = vector.multi_reduction <add>, %14, %cst_10 [1] : vector<8x128xf32> to vector<8xf32>
      %16 = vector.shape_cast %15 : vector<8xf32> to vector<8x1xf32>
      %cst_11 = arith.constant 1.280000e+02 : f32
      %17 = vector.broadcast %cst_11 : f32 to vector<8x1xf32>
      %18 = arith.divf %16, %17 : vector<8x1xf32>
      %cst_12 = arith.constant 9.99999974E-6 : f32
      %19 = vector.broadcast %cst_12 : f32 to vector<8x1xf32>
      %20 = arith.addf %18, %19 : vector<8x1xf32>
      %21 = math.rsqrt %20 : vector<8x1xf32>
      %22 = vector.broadcast %21 : vector<8x1xf32> to vector<8x128xf32>
      %23 = arith.mulf %7, %22 : vector<8x128xf32>
      %c0_13 = arith.constant 0 : index
      %c0_14 = arith.constant 0 : index
      %c0_15 = arith.constant 0 : index
      %24 = vector.load %arg5[%c0_13, %c0_14, %c0_15] : memref<1x1x128xf32, #tpu.memory_space<vmem>>, vector<1x1x128xf32>
      %25 = vector.shape_cast %24 : vector<1x1x128xf32> to vector<1x128xf32>
      %26 = vector.broadcast %25 : vector<1x128xf32> to vector<8x128xf32>
      %27 = arith.mulf %23, %26 : vector<8x128xf32>
      %28 = arith.truncf %27 : vector<8x128xf32> to vector<8x128xbf16>
      %c0_16 = arith.constant 0 : index
      %c0_17 = arith.constant 0 : index
      %c0_18 = arith.constant 0 : index
      %c0_19 = arith.constant 0 : index
      %29 = vector.load %arg6[%c0_16, %c0_17, %c0_18, %c0_19] : memref<1x1x8x128xbf16, #tpu.memory_space<vmem>>, vector<1x1x8x128xbf16>
      %30 = vector.shape_cast %29 : vector<1x1x8x128xbf16> to vector<8x128xbf16>
      %31 = vector.shape_cast %28 : vector<8x128xbf16> to vector<1x1x8x128xbf16>
      tpu.vector_store %arg6[%c0_16, %c0_17, %c0_18, %c0_19], %31 {strides = array<i32>} : memref<1x1x8x128xbf16, #tpu.memory_space<vmem>>, vector<1x1x8x128xbf16>,
    } else {
    }
    %c0_i32_8 = arith.constant 0 : i32
    %11 = arith.cmpi ne, %arg0, %c0_i32_8 : i32
    %12 = arith.extui %11 : i1 to i32
    %c0_i32_9 = arith.constant 0 : i32
    %13 = arith.cmpi ne, %12, %c0_i32_9 : i32
    scf.if %13 {
      %14 = arith.truncf %7 : vector<8x128xf32> to vector<8x128xbf16>
      %c0_10 = arith.constant 0 : index
      %c0_11 = arith.constant 0 : index
      %c0_12 = arith.constant 0 : index
      %c0_13 = arith.constant 0 : index
      %15 = vector.load %arg6[%c0_10, %c0_11, %c0_12, %c0_13] : memref<1x1x8x128xbf16, #tpu.memory_space<vmem>>, vector<1x1x8x128xbf16>
      %16 = vector.shape_cast %15 : vector<1x1x8x128xbf16> to vector<8x128xbf16>
      %17 = vector.shape_cast %14 : vector<8x128xbf16> to vector<1x1x8x128xbf16>
      tpu.vector_store %arg6[%c0_10, %c0_11, %c0_12, %c0_13], %17 {strides = array<i32>} : memref<1x1x8x128xbf16, #tpu.memory_space<vmem>>, vector<1x1x8x128xbf16>,
    } else {
    }
    return
  }
  func.func @transform_0(%arg0: i32, %arg1: i32) -> (i32, i32, i32) {
    %c0_i32 = arith.constant 0 : i32
    %c0_i32_0 = arith.constant 0 : i32
    %c0_i32_1 = arith.constant 0 : i32
    return %arg1, %c0_i32, %c0_i32_0 : i32, i32, i32
  }
  func.func @transform_1(%arg0: i32, %arg1: i32) -> (i32, i32) {
    %c0_i32 = arith.constant 0 : i32
    %c0_i32_0 = arith.constant 0 : i32
    return %c0_i32, %arg0 : i32, i32
  }
  func.func @transform_2(%arg0: i32, %arg1: i32) -> (i32, i32, i32) {
    %c0_i32 = arith.constant 0 : i32
    %c0_i32_0 = arith.constant 0 : i32
    %c0_i32_1 = arith.constant 0 : i32
    return %arg0, %c0_i32, %c0_i32_0 : i32, i32, i32
  }
  func.func @transform_3(%arg0: i32, %arg1: i32) -> (i32, i32, i32) {
    %c0_i32 = arith.constant 0 : i32
    %c0_i32_0 = arith.constant 0 : i32
    %c0_i32_1 = arith.constant 0 : i32
    %c0_i32_2 = arith.constant 0 : i32
    return %c0_i32, %c0_i32_0, %c0_i32_1 : i32, i32, i32
  }
  func.func @transform_4(%arg0: i32, %arg1: i32) -> (i32, i32, i32, i32) {
    %c0_i32 = arith.constant 0 : i32
    %c0_i32_0 = arith.constant 0 : i32
    %c0_i32_1 = arith.constant 0 : i32
    return %arg0, %arg1, %c0_i32, %c0_i32_0 : i32, i32, i32, i32
  }
}

</mosaic_0001>

<bundles_post_ra>
// kernel: tpu_custom_call.1
= control target key start
LH: loop header
LB: loop body
LE: loop exit
PB: predicated region body
PF: predicated region fallthrough
CT: control target
= control target key end

     0   :  { %s1174_s0 = inlined_call_operand.hbm [shape: bf16[2,8,32], index: 0, kind: input, shape index: {}]   ;;  %s1175_s1 = inlined_call_operand.hbm [shape: bf16[32,256], index: 1, kind: input, shape index: {}]   ;;  %s1176_s2 = inlined_call_operand.vmem [shape: f32[2,1,128], index: 2, kind: input, shape index: {}]   ;;  %s1177_s3 = inlined_call_operand.vmem [shape: f32[1,1,128], index: 3, kind: input, shape index: {}]   ;;  %s1178_s4 = inlined_call_operand.hbm [shape: bf16[2,2,8,128], index: 4, kind: output, shape index: {}]  }
   0x1   :  { %1191 = sst [smem:[#allocation20_spill]] %s1175_s1 }
   0x2   :  { %9 = vsyncpa [#allocation3], 0 }
   0x3   :  { %11 = vsyncpa [#allocation3 + $0x1], 0 }
   0x4   :  { %12 = vsyncpa [#allocation6], 0 }
   0x5   :  { %13 = vsyncpa [#allocation4], 0 }
   0x6   :  { %15 = vsyncpa [#allocation4 + $0x1], 0  ;;  %s894_s15 = smov 0   ;;  %s896_s16 = smov 0  }
   0x7   :  { %s898_s17 = smov 0   ;;  %s900_s18 = smov 0  }
   0x8   :  { %s902_s19 = smov 0   ;;  %s904_s20 = smov 0  }
   0x9   :  { %s906_s21 = smov 0   ;;  %s908_s22 = smov 0  }
   0xa   :  { %s910_s23 = smov 0   ;;  %s912_s24 = smov 0  }
   0xb   :  { %s914_s25 = smov 0   ;;  %s916_s26 = smov 0  }
   0xc   :  { %s918_s27 = smov 0   ;;  %s920_s28 = smov 0  }
   0xd LB: > { %1192 = sst [smem:[#allocation11_spill]] %s823_s19  ;;  %s1179_s29 = sadd.s32 4294967295, %s859_s28   ;;  %s859_s28 = sphi %s920_s28, %s21_s28   ;;  %s855_s27 = sphi %s918_s27, %s1224_s27   ;;  %s851_s26 = sphi %s916_s26, %s1223_s26   ;;  %s847_s25 = sphi %s914_s25, %s1222_s25   ;;  %s843_s24 = sphi %s912_s24, %s1221_s24   ;;  %s839_s23 = sphi %s910_s23, %s1220_s23   ;;  %s835_s22 = sphi %s908_s22, %s1229_s22   ;;  %s831_s21 = sphi %s906_s21, %s1228_s21   ;;  %s827_s20 = sphi %s904_s20, %s1218_s20   ;;  %s823_s19 = sphi %s902_s19, %s1217_s19   ;;  %s819_s18 = sphi %s900_s18, %s1216_s18   ;;  %s815_s17 = sphi %s898_s17, %s1227_s17   ;;  %s811_s16 = sphi %s896_s16, %s1226_s16   ;;  %s807_s15 = sphi %s894_s15, %s1225_s15  }
   0xe   : > { %1193 = sst [smem:[#allocation12_spill]] %s827_s20  ;;  %p79_p0 = scmp.ne.s32.totalorder %s823_s19, %s819_s18 }
   0xf   : > { %1194 = sst [smem:[#allocation13_spill]] %s839_s23  ;;  %p966_p1 = scmp.eq.s32.totalorder %s1179_s29, 0 }
  0x10   : > { %1195 = sst [smem:[#allocation14_spill]] %s851_s26  ;;  %p482_p2 = scmp.ge.s32.totalorder %s859_s28, 1 }
  0x11   : > { %1196 = sst [smem:[#allocation15_spill]] %s855_s27  ;;  %p165_p3 = scmp.lt.s32.totalorder %s859_s28, 5 }
  0x12   : > { %s1197_s30 = scalar_select %p966_p1, 1, 0 }
  0x13   : > { %s483_s5 = sshll.u32 %s847_s25, 6  ;;  %p975_p4 = por %p79_p0, %p966_p1 }
  0x14   : > { %s1199_s1 = sld [smem:[#allocation20_spill]]  ;;  %p984_p5 = pnand %p482_p2, %p165_p3 }
  0x15   : > { %s1198_s6 = scalar_select %p975_p4, 1, 0 }
  0x16   : > { %s1200_s10 = scalar_select %p984_p5, 1, 0 }
  0x17   : > { %s861_s11 = smov [#allocation5]   ;;  %p519_p6 = pneg %p984_p5 }
  0x18   : > { %s179_s12 = sshll.u32 %s861_s11, 4  ;;  %s180_s12 = int_to_ptr.vmem [resolvable:$true] %s179_s12 }
  0x19   : > { %p992_p7 = pnand %p519_p6, %p975_p4 }
  0x1a   : > { %s982_s9 = scalar_lea.hbm %s1199_s1, %s483_s5  ;;  %s660_s7 = scalar_lea.hbm %s1199_s1, 512 }
  0x1b   : > { %s655_s14 = scalar_lea.hbm %s982_s9, 256  ;;  %p657_p9 = pneg %p992_p7 }
  0x1c   : > { %p656_p8 = scmp.ne.s32.totalorder %s982_s9, %s655_s14  ;;  %p661_p12 = scmp.lt.s32.totalorder %s982_s9, %s1199_s1 }
  0x1d   : > { %p662_p13 = scmp.lt.s32.totalorder %s660_s7, %s655_s14 }
  0x1e   : > { %p658_p10 = pnand %p657_p9, %p656_p8 }
  0x1f   : > { %p663_p0 = por %p662_p13, %p661_p12 }
  0x20   : > { %p659_p11 = pneg %p658_p10 }
  0x22   : > { %p664_p2 = pnand %p663_p0, %p659_p11 }
  0x24   : > { %667 = shalt.err (!%p664_p2)
}
  0x25   : > { %s668_s29 = scalar_lea.vmem %s180_s12, 256  ;;  %p676_p5 = scmp.lt.s32.totalorder %s180_s12, %s180_s12 }
  0x26   : > { %p669_p3 = scmp.ne.s32.totalorder %s180_s12, %s668_s29  ;;  %p677_p1 = scmp.lt.s32.totalorder %s668_s29, %s668_s29 }
  0x28   : > { %p671_p6 = pnand %p669_p3, %p657_p9  ;;  %p678_p8 = por %p677_p1, %p676_p5 }
  0x2a   : > { %p672_p4 = pneg %p671_p6 }
  0x2c   : > { %p679_p10 = pnand %p678_p8, %p672_p4 }
  0x2e   : > { %682 = shalt.err (!%p679_p10)
}
  0x2f   : > { %s862_s19 = smov 128   ;;  %s863_s14 = smov 64  }
  0x30   : > { %s864_s18 = smov 4   ;;  %s481_s29 = sadd.s32 4294967294, %s859_s28  }
  0x31   : > { %522 = dma.hbm_to_vmem [thread:$0]  (!%p992_p7), %s982_s9, 256, %s180_s12, [#allocation6], %s862_s19, %s863_s14, %s864_s18  }
  0x32   : > { %s30_s5 = sadd.s32 1, %s851_s26  ;;  %s33_s7 = sadd.s32 1, %s855_s27 }
  0x33   : > { %p31_p1 = scmp.ge.s32.totalorder %s30_s5, 2  ;;  %s40_s8 = sadd.s32 1, %s839_s23 }
  0x34   : > { %p47_p4 = scmp.ne.s32.totalorder %s839_s23, %s835_s22  ;;  %p48_p5 = scmp.eq.s32.totalorder %s859_s28, 0 }
  0x35   : > { %s1231_s5 = smov (%p31_p1, %s30_s5), 0  ;;  %s1233_s7 = smov (!%p31_p1, %s33_s7), %s855_s27 }
  0x36   : > { %1202 = sst [smem:[#allocation16_spill]] %s1231_s5  ;;  %s37_s13 = ssub.s32 %s851_s26, %s1231_s5 }
  0x37   : > { %p1022_p7 = por %p48_p5, %p47_p4  ;;  %p35_p9 = scmp.ge.s32.totalorder %s1233_s7, 2 }
  0x38   : > { %p38_p11 = scmp.eq.s32.totalorder %s37_s13, 0  ;;  %p53_p12 = scmp.ne.s32.totalorder %s835_s22, %s831_s21 }
  0x39   : > { %s66_s9 = sadd.s32 1, %s827_s20  ;;  %s1235_s7 = smov (%p35_p9, %s1233_s7), 0 }
  0x3a   : > { %1204 = sst [smem:[#allocation17_spill]] %s1235_s7  ;;  %p1206_p13 = scmp.ne.s32.totalorder %s1197_s30, 0 }
  0x3b   : > { %s1032_s12 = scalar_select %p38_p11, %s839_s23, %s40_s8  }
  0x3c   : > { %p1036_p0 = por %p1206_p13, %p53_p12  ;;  %s63_s14 = ssub.s32 %s855_s27, %s1235_s7 }
  0x3d   : > { %1205 = sst [smem:[#allocation18_spill]] %s1032_s12  ;;  %p64_p2 = scmp.eq.s32.totalorder %s63_s14, 0 }
  0x3e   : > { %s138_s18 = sor.u32 %s63_s14, %s37_s13  ;;  %s141_s1 = sadd.s32 1, %s815_s17 }
  0x3f   : > { %p139_p3 = scmp.eq.s32.totalorder %s138_s18, 0  ;;  %p151_p6 = scmp.ne.s32.totalorder %s815_s17, %s811_s16 }
  0x40   : > { %s1044_s21 = scalar_select %p64_p2, %s827_s20, %s66_s9  }
  0x41   : > { %s1047_s5 = scalar_select %p139_p3, %s815_s17, %s141_s1  }
  0x42   : > { %1208 = sst [smem:[#allocation19_spill]] %s1044_s21  ;;  %s1209_s8 = sadd.s32 4294967295, %s859_s28  }
  0x43   : > { %p152_p8 = scmp.eq.s32.totalorder %s1209_s8, 3  ;;  %p157_p10 = scmp.ne.s32.totalorder %s811_s16, %s807_s15 }
  0x44   : > { %p158_p1 = scmp.eq.s32.totalorder %s481_s29, 3  ;;  %p531_p5 = scmp.lt.s32.totalorder %s859_s28, 4 }
  0x45   : > { %p1055_p4 = por %p152_p8, %p151_p6  ;;  %s196_s13 = sand.u32 1, %s839_s23  }
  0x46   : > { %p1060_p9 = por %p158_p1, %p157_p10  ;;  %s485_s9 = sshll.u32 %s196_s13, 2 }
  0x47   : > { %s486_s14 = sshll.u32 %s851_s26, 6  ;;  %s200_s12 = scalar_lea.vmem [#allocation2], %s485_s9 }
  0x48   : > { %s205_s27 = scalar_lea.hbm %s1174_s0, %s486_s14  ;;  %s207_s8 = sshll.u32 %s200_s12, 4  ;;  %s208_s8 = int_to_ptr.vmem [resolvable:$true] %s207_s8 }
  0x49   : > { %p1071_p11 = pnand %p531_p5, %p1022_p7  ;;  %s197_s21 = scalar_lea.sflag [#allocation3], %s196_s13 }
  0x4a   : > { %s696_s20 = scalar_lea.vmem %s208_s8, 64  ;;  %s865_s26 = smov [#allocation2]  }
  0x4b   : > { %p685_p12 = pneg %p1071_p11  ;;  %p697_p13 = scmp.ne.s32.totalorder %s208_s8, %s696_s20 }
  0x4c   : > { %s701_s23 = sshll.u32 %s865_s26, 4  ;;  %s702_s23 = int_to_ptr.vmem [resolvable:$false] %s701_s23 }
  0x4d   : > { %p699_p2 = pnand %p697_p13, %p685_p12  ;;  %s703_s14 = scalar_lea.vmem %s702_s23, 128 }
  0x4e   : > { %p704_p6 = scmp.lt.s32.totalorder %s208_s8, %s702_s23  ;;  %p705_p8 = scmp.lt.s32.totalorder %s703_s14, %s696_s20 }
  0x4f   : > { %p700_p3 = pneg %p699_p2 }
  0x50   : > { %p706_p10 = por %p705_p8, %p704_p6 }
  0x52   : > { %p707_p1 = pnand %p706_p10, %p700_p3 }
  0x54   : > { %710 = shalt.err (!%p707_p1)
}
  0x55   : > { %526 = dma.hbm_to_vmem [thread:$0]  (!%p1071_p11), %s205_s27, 64, %s208_s8, %s197_s21  }
  0x56   : > { %p1213_p7 = scmp.ne.s32.totalorder %s1200_s10, 0 }
  0x57   : > { %s224_s19 = sand.u32 (!%p1213_p7), 1, %s835_s22  }
  0x58   : > { %222 = sbr.rel (%p1213_p7) target bundleno = 505 (0x1f9), region = 36  ;;  %s488_s12 = sshll.u32 (!%p1213_p7), %s224_s19, 2 }
  0x59   : > { %s225_s13 = scalar_lea.sflag (!%p1213_p7), [#allocation3], %s224_s19  ;;  %s228_s9 = scalar_lea.vmem (!%p1213_p7), [#allocation2], %s488_s12 }
  0x5d   : > { %794 = dma.done.wait (%p1036_p0), %s225_s13, 64  }
  0x5e   : > { %796 = vsyncadd (%p1036_p0), %s225_s13, 4294967232  ;;  %p1214_p5 = scmp.ne.s32.totalorder %s1198_s6, 0 }
  0x60   : > { %798 = dma.done.wait (%p1214_p5), [#allocation6], 256  }
  0x61   : > { %800 = vsyncadd (%p1214_p5), [#allocation6], 4294967040  ;;  %s257_s20 = sand.u32 1, %s811_s16   ;;  %v866_v0 = vmov 0.0   ;;  %vm867_vm0 = vmmov 0   ;;  %v651_v1 = vld [vmem:[#allocation5 + $0x8] sm:$0xff]  }
  0x62   : > { %s489_s23 = sshll.u32 %s257_s20, 2  ;;  %505 = vmatprep.subr.bf16.mxu0 %v866_v0  ;;  %509 = vmatprep.mubr.msk.bf16.mxu0 %vm867_vm0, %v866_v0  ;;  %v652_v2 = vld [vmem:[#allocation5] sm:$0xff]   ;;  %v264_v3 = vld [vmem:[%s228_s9] sm:$0xf]  ;;  %vm288_vm1 = vcmask 261120   ;;  %p260_p0 = scmp.lt.s32.totalorder %s847_s25, 1 }
  0x63   : > { %506 = vmatpush3.bf16.msra.mxu0 %v651_v1  ;;  %s259_s11 = scalar_lea.vmem [#allocation7], %s489_s23  ;;  %p494_p11 = scmp.ne.s32.totalorder %s847_s25, 0 }
  0x64   : > { %507 = vmatprep.subr.bf16.mxu0 %v866_v0  ;;  %s261_s26 = scalar_select %p260_p0, %s847_s25, 1 }
  0x66   : > { %s262_s10 = scalar_lea.vmem %s1176_s2, %s261_s26 }
  0x67   : > { %508 = vmatpush3.bf16.msra.mxu0 %v652_v2  ;;  %v490_v4 = vld [vmem:[%s262_s10] ss:$0 sm:$0xff] }
  0x6a   : > { %510 = vmatmul.mubr.msk.bf16.vlgmr.msra.gmra.mxu0 %vm288_vm1, %v264_v3 }
 0x12a   : > { %v326_v5 = vpop.f32.mrf.mxu0 }
 0x12b   : > { %v327_v6 = vadd.f32 %v490_v4, %v326_v5 }
 0x12c   : > { %v511_v7 = vpop.f32.mrf.mxu0  ;;  %335 = sbr.rel (%p494_p11) target bundleno = 470 (0x1d6), region = 48 }
 0x12e   : > { %v329_v8 = vpop.f32.mrf.mxu0 }
 0x130   : > { %v512_v9 = vpop.f32.mrf.mxu0 }
 0x131   : > { %v336_v10 = vmul.f32 %v327_v6, %v327_v6  ;;  %v495_v15 = vld [vmem:[%s1177_s3] ss:$0 sm:$0xff] }
 0x133   : > { %337 = vadd.xlane.f32.xlu0 %v336_v10 }
 0x1bc   : > { %v338_v11 = vpop.xlane.xlu0 %337 }
 0x1bd   : > { %v340_v12 = vmul.f32 0.0078125, %v338_v11 }
 0x1bf   : > { %v341_v13 = vadd.f32 1e-05, %v340_v12 }
 0x1c1   : > { %653 = vrsqrt.f32 %v341_v13 }
 0x1ce   : > { %v654_v14 = vpop.eup %653 }
 0x1cf   : > { %v343_v16 = vmul.f32 %v654_v14, %v327_v6 }
 0x1d1   : > { %v351_v17 = vmul.f32 %v495_v15, %v343_v16 }
 0x1d3   : > { %v352_v18 = vpack.c.bf16 %v351_v17, %v351_v17 }
 0x1d5   : > { %353 = vst [vmem:[%s259_s11] sm:$0xf] %v352_v18 }
 0x1d6 PF: > { %p496_p12 = scmp.eq.s32.totalorder %s847_s25, 0 }
 0x1d8   : > { %357 = sbr.rel (%p496_p12) target bundleno = 480 (0x1e0), region = 52 }
 0x1dd   : > { %v358_v19 = vpack.c.bf16 %v327_v6, %v327_v6 }
 0x1df   : > { %359 = vst [vmem:[%s259_s11] sm:$0xf] %v358_v19 }
 0x1e0 PF: > { %s498_s1 = sshll.u32 %s847_s25, 1  ;;  %s376_s29 = sshll.u32 %s259_s11, 4  ;;  %s377_s29 = int_to_ptr.vmem [resolvable:$true] %s376_s29 }
 0x1e1   : > { %s372_s8 = sadd.s32 %s843_s24, %s498_s1  ;;  %s361_s9 = scalar_lea.sflag [#allocation4], %s257_s20 }
 0x1e2   : > { %s499_s14 = sshll.u32 %s372_s8, 6  ;;  %s711_s23 = scalar_lea.vmem %s377_s29, 64 }
 0x1e3   : > { %s374_s13 = scalar_lea.hbm %s1178_s4, %s499_s14  ;;  %p712_p13 = scmp.ne.s32.totalorder %s377_s29, %s711_s23 }
 0x1e4   : > { %s868_s26 = smov [#allocation7]  }
 0x1e5   : > { %p713_p2 = pnand %p712_p13, %p1055_p4  ;;  %s715_s27 = sshll.u32 %s868_s26, 4  ;;  %s716_s27 = int_to_ptr.vmem [resolvable:$false] %s715_s27 }
 0x1e6   : > { %s717_s6 = scalar_lea.vmem %s716_s27, 128  ;;  %p718_p6 = scmp.lt.s32.totalorder %s377_s29, %s716_s27 }
 0x1e7   : > { %p714_p3 = pneg %p713_p2  ;;  %p719_p8 = scmp.lt.s32.totalorder %s717_s6, %s711_s23 }
 0x1e9   : > { %p720_p10 = por %p719_p8, %p718_p6 }
 0x1eb   : > { %p721_p1 = pnand %p720_p10, %p714_p3 }
 0x1ed   : > { %724 = shalt.err (!%p721_p1)
}
 0x1ee   : > { %s725_s24 = scalar_lea.hbm %s374_s13, 64  ;;  %s729_s10 = scalar_lea.hbm %s1178_s4, 256 }
 0x1ef   : > { %p726_p7 = scmp.ne.s32.totalorder %s374_s13, %s725_s24  ;;  %p730_p11 = scmp.lt.s32.totalorder %s374_s13, %s1178_s4 }
 0x1f0   : > { %p731_p12 = scmp.lt.s32.totalorder %s729_s10, %s725_s24 }
 0x1f1   : > { %p727_p5 = pnand %p726_p7, %p1055_p4 }
 0x1f2   : > { %p732_p13 = por %p731_p12, %p730_p11 }
 0x1f3   : > { %p728_p0 = pneg %p727_p5 }
 0x1f5   : > { %p733_p2 = pnand %p732_p13, %p728_p0 }
 0x1f7   : > { %736 = shalt.err (!%p733_p2)
}
 0x1f8   : > { %517 = dma.vmem_to_hbm [thread:$0]  (%p1055_p4), %s377_s29, 64, %s374_s13, %s361_s9  }
 0x1f9 PF: > { %p532_p3 = scmp.ge.s32.totalorder %s859_s28, 2  ;;  %s388_s18 = sand.u32 1, %s807_s15  }
 0x1fa   : > { %s389_s1 = scalar_lea.sflag [#allocation4], %s388_s18 }
 0x1fb   : > { %p528_p6 = pnand %p532_p3, %p1060_p9 }
 0x1fd   : > { %p529_p8 = pneg %p528_p6 }
 0x1ff   : > { %802 = dma.done.wait (%p529_p8), %s389_s1, 64  }
 0x200   : > { %804 = vsyncadd (%p529_p8), %s389_s1, 4294967232  ;;  %s21_s28 = sadd.s32 1, %s859_s28   ;;  %s1216_s18 = sld [smem:[#allocation11_spill]] }
 0x201   : > { %p1127_p10 = scmp.ge.s32.totalorder %s21_s28, 6   ;;  %s1217_s19 = sld [smem:[#allocation12_spill]] }
 0x202   : > { %s1218_s20 = sld [smem:[#allocation19_spill]]  ;;  %s1225_s15 = smov %s811_s16 }
 0x203   : > { %s1219_s30 = sld [smem:[#allocation13_spill]]  ;;  %s1226_s16 = smov %s815_s17 }
 0x204   : > { %s1220_s23 = sld [smem:[#allocation18_spill]]  ;;  %s1227_s17 = smov %s1047_s5 }
 0x205   : > { %s1221_s24 = sld [smem:[#allocation14_spill]]  ;;  %s1228_s21 = smov %s835_s22 }
 0x206   : > { %s1222_s25 = sld [smem:[#allocation15_spill]]  ;;  %20 = sbr.rel (!%p1127_p10) target bundleno = 13 (0xd), region = 97 }
 0x207   : > { %s1223_s26 = sld [smem:[#allocation16_spill]] }
 0x208   : > { %s1224_s27 = sld [smem:[#allocation17_spill]] }
 0x209   : > { %s1229_s22 = smov %s1219_s30 }
 0x20b   :  { %394 = vsyncpa [#allocation3], 1 }
 0x20c   :  { %396 = vsyncpa [#allocation3 + $0x1], 1 }
 0x20d   :  { %397 = vsyncpa [#allocation6], 1 }
 0x20e   :  { %398 = vsyncpa [#allocation4], 1 }
 0x20f   :  { %400 = vsyncpa [#allocation4 + $0x1], 1 }

</bundles_post_ra>
